<compile_context>
chip_gen: v7x
topology: tpu7x:2x2x1
jax: 0.10.0
libtpu: 0.0.40
codegen_flags: <defaults>
</compile_context>

<pallas_src>
import functools

import jax
import jax.numpy as jnp
from jax import lax
from jax.experimental import pallas as pl
from jax.experimental.pallas import tpu as pltpu


def _cdiv(a, b):
    return -(-a // b)


def _round_up(x, m):
    return _cdiv(x, m) * m


def _tpu_vmem_bytes():
    try:
        return int(pltpu.get_tpu_info().vmem_capacity_bytes)
    except Exception:
        return 64 * 2 ** 20          # conservative (v7x-sized) fallback


_VMEM_CAP = _tpu_vmem_bytes()
_BIG_VMEM = _VMEM_CAP >= 96 * 2 ** 20          # v5e / v6e have 128 MiB, v7x has 64 MiB
_WEIGHT_BLOCK_BYTES = (16 if _BIG_VMEM else 8) * 2 ** 20
_Z_BLOCK_BYTES = (8 if _BIG_VMEM else 4) * 2 ** 20
_X_BLOCK_BYTES = 2 * 2 ** 20
_VMEM_LIMIT = (96 if _BIG_VMEM else 48) * 2 ** 20


# ----------------------------------------------------------------------------
# Pallas kernel: per-w-parity conv-transpose matmul.
# The input is read directly (no HBM im2col); the <=4 w-tap slices are built in
# VMEM and accumulated with full-K bf16 MXU matmuls into an f32 accumulator.
# ----------------------------------------------------------------------------
def _conv_mm_kernel(x_ref, b_ref, o_ref, *, kwp, cin, cw, front):
    rt = x_ref.shape[0]
    acc = None
    for u in range(kwp):
        a = x_ref[:, front - u:front - u + cw, :].reshape(rt * cw, cin)
        p = jnp.dot(a, b_ref[u * cin:(u + 1) * cin, :],
                    preferred_element_type=jnp.float32)
        acc = p if acc is None else acc + p
    o_ref[...] = acc.astype(o_ref.dtype)


def _conv_matmul(xw, bm, *, kwp, cw, front):
    """xw: [R, Wp, Cin] bf16 (w-padded input rows); bm: [kwp*Cin, Ntot] bf16.

    Returns Z: [R*cw, Ntot] bf16 where Z[(r, c), n] = sum_u x[r, c-u, :] @ bm[u].
    """
    r, wp, cin = xw.shape
    kk, ntot = bm.shape
    assert kk == kwp * cin

    # N tiling: a single full-width block when the weight fits (or Ntot is not
    # 128-aligned); otherwise the largest 128-multiple divisor of Ntot that fits,
    # so the output never needs a trailing slice.
    if kk * ntot * 2 <= _WEIGHT_BLOCK_BYTES or ntot % 128 != 0:
        tn = ntot
    else:
        cand = [d for d in range(128, ntot + 1, 128) if ntot % d == 0]
        fits = [d for d in cand if kk * d * 2 <= _WEIGHT_BLOCK_BYTES]
        tn = max(fits) if fits else min(cand)

    # Row tiling: largest divisor of R whose Z / x blocks stay inside the budgets.
    rt_cap = max(1, min(_Z_BLOCK_BYTES // (cw * tn * 2),
                        _X_BLOCK_BYTES // (wp * cin * 2)))
    rt = max(d for d in range(1, r + 1) if r % d == 0 and d <= rt_cap)

    grid = (ntot // tn, r // rt)   # weights on the outer axis -> streamed once per tile
    kern = functools.partial(_conv_mm_kernel, kwp=kwp, cin=cin, cw=cw, front=front)
    return pl.pallas_call(
        kern,
        out_shape=jax.ShapeDtypeStruct((r * cw, ntot), jnp.bfloat16),
        grid=grid,
        in_specs=[
            pl.BlockSpec((rt, wp, cin), lambda j, i: (i, 0, 0)),
            pl.BlockSpec((kk, tn), lambda j, i: (0, j)),
        ],
        out_specs=pl.BlockSpec((rt * cw, tn), lambda j, i: (i, j)),
        compiler_params=pltpu.CompilerParams(
            dimension_semantics=("parallel", "parallel"),
            vmem_limit_bytes=_VMEM_LIMIT),
    )(xw, bm)


# ----------------------------------------------------------------------------
# Pallas kernel: small fused linear (zc @ W + b), single block.
# ----------------------------------------------------------------------------
def _linear_kernel(x_ref, w_ref, b_ref, o_ref):
    o_ref[...] = (jnp.dot(x_ref[...], w_ref[...],
                          preferred_element_type=jnp.float32) + b_ref[...])


def linear_pallas(x, w, b):
    return pl.pallas_call(
        _linear_kernel,
        out_shape=jax.ShapeDtypeStruct((x.shape[0], w.shape[1]), jnp.float32),
    )(x, w, b)


# ----------------------------------------------------------------------------
# One-time weight preparation (BN fold + polyphase layout + bf16).
# ----------------------------------------------------------------------------
def prepare_conv_weights(w, scale=None):
    """w: PyTorch ConvTranspose3d weight [Cin, Cout, k, k, k].

    Returns {pw: Bm} with Bm[(u, ci), (pd, ph, ud, uh, co)] laid out for _conv_matmul;
    columns are grouped by output (d, h) parity so the tap reduction reads each column
    exactly once.
    """
    cin, k = w.shape[0], w.shape[2]
    if scale is not None:
        w = w * scale[None, :, None, None, None]
    out = {}
    for pw in (0, 1):
        kwp = len(range(pw, k, 2))
        wsub = w[:, :, :, :, pw::2]                              # [Cin, Cout, k, k, kwp]
        cols = []
        for pd in (0, 1):
            for ph in (0, 1):
                blk = wsub[:, :, pd::2, ph::2, :]                # [Cin, Cout, kdp, khp, kwp]
                blk = jnp.transpose(blk, (4, 0, 2, 3, 1))        # [kwp, Cin, kdp, khp, Cout]
                cols.append(blk.reshape(kwp * cin, -1))
        out[pw] = jnp.concatenate(cols, axis=1).astype(jnp.bfloat16)   # [kwp*Cin, k*k*Cout]
    return out


# ----------------------------------------------------------------------------
# XLA glue: d/h tap reduction + bias/activation + parity interleave.
# ----------------------------------------------------------------------------
def _interleave(parts, axis, out_size):
    """parts[p] holds entries whose index along `axis` is congruent to p (mod len(parts))."""
    n0 = max(p.shape[axis] for p in parts)
    padded = []
    for p in parts:
        d = n0 - p.shape[axis]
        if d:
            pw_ = [(0, 0)] * p.ndim
            pw_[axis] = (0, d)
            p = jnp.pad(p, pw_)
        padded.append(p)
    y = jnp.stack(padded, axis=axis + 1)
    shp = list(padded[0].shape)
    shp[axis] = n0 * len(parts)
    y = y.reshape(shp)
    return lax.slice_in_dim(y, 0, out_size, axis=axis)


def _reduce_taps(z5, *, k, cout, o, bias, act, out_dtype):
    """z5: [B, S, S, Cw, k*k*Cout] bf16 (columns grouped by (pd, ph))."""
    bsz, s = z5.shape[0], z5.shape[1]
    cw = z5.shape[3]
    off = 0
    d_parts = []
    for pd in (0, 1):
        kdp = len(range(pd, k, 2))
        dp = _cdiv(o - pd, 2)
        h_parts = []
        for ph in (0, 1):
            khp = len(range(ph, k, 2))
            hp = _cdiv(o - ph, 2)
            ng = kdp * khp * cout
            zg = lax.slice_in_dim(z5, off, off + ng, axis=4)
            off += ng
            zg = zg.reshape(bsz, s, s, cw, kdp, khp, cout)
            acc = jnp.zeros((bsz, dp, hp, cw, cout), jnp.float32)
            for ud in range(kdp):
                for uh in range(khp):
                    term = zg[:, :, :, :, ud, uh, :].astype(jnp.float32)
                    acc = acc + jnp.pad(
                        term, ((0, 0), (ud, dp - s - ud), (uh, hp - s - uh),
                               (0, 0), (0, 0)))
            if bias is not None:
                acc = acc + bias
            if act == "relu":
                acc = jnp.maximum(acc, 0.0)
            elif act == "tanh":
                acc = jnp.tanh(acc)
            h_parts.append(acc.astype(out_dtype))
        d_parts.append(_interleave(h_parts, axis=2, out_size=o))
    return _interleave(d_parts, axis=1, out_size=o)


# ----------------------------------------------------------------------------
# ConvTranspose3d (stride 2, padding 0, bias=False) + folded BN + activation.
# ----------------------------------------------------------------------------
def conv_transpose3d_prepared(x, bms, *, k, cout, bias=None, act=None):
    """x: [B, S, S, S, Cin] channels-last; bms: {0: Bm_pw0, 1: Bm_pw1} prepared weights."""
    bsz, s = x.shape[0], x.shape[1]
    cin = x.shape[4]
    o = 2 * s + k - 2
    cw = _round_up(_cdiv(o, 2), 8)          # per-parity w extent, padded to x8 (extra cols
    front = _cdiv(k, 2) - 1                 # are zeros / dropped by the final interleave)
    wp = front + cw

    xw = jnp.pad(x.astype(jnp.bfloat16),
                 ((0, 0), (0, 0), (0, 0), (front, cw - s), (0, 0)))
    xw = xw.reshape(bsz * s * s, wp, cin)

    out_dtype = jnp.float32 if act is None else jnp.bfloat16
    parts = []
    for pw in (0, 1):
        kwp = len(range(pw, k, 2))
        z2 = _conv_matmul(xw, bms[pw], kwp=kwp, cw=cw, front=front)
        z5 = z2.reshape(bsz, s, s, cw, -1)
        parts.append(_reduce_taps(z5, k=k, cout=cout, o=o,
                                  bias=bias, act=act, out_dtype=out_dtype))
    return _interleave(parts, axis=3, out_size=o)       # [B, O, O, O, Cout]


# ----------------------------------------------------------------------------
# Generator: params, one-time prep, forward.
# ----------------------------------------------------------------------------
_GEN_CFG = [("u1", 768, 384, 5, "relu"),
            ("u2", 384, 256, 5, "relu"),
            ("u3", 256, 192, 5, "relu"),
            ("u4", 192, 64, 5, "relu"),
            ("u5", 64, 3, 8, "tanh")]


def init_params(key):
    keys = iter(jax.random.split(key, 32))
    p = {"linear_w": 0.05 * jax.random.normal(next(keys), (768, 115), jnp.float32),
         "linear_b": 0.05 * jax.random.normal(next(keys), (768,), jnp.float32)}
    for i, (name, cin, cout, k, _) in enumerate(_GEN_CFG):
        p[f"{name}_w"] = 0.02 * jax.random.normal(next(keys), (cin, cout, k, k, k),
                                                  jnp.float32)
        if i < 4:   # BatchNorm3d follows the first four transposed convs
            p[f"{name}_bn_gamma"] = 1.0 + 0.1 * jax.random.normal(next(keys), (cout,))
            p[f"{name}_bn_beta"] = 0.1 * jax.random.normal(next(keys), (cout,))
            p[f"{name}_bn_mean"] = 0.1 * jax.random.normal(next(keys), (cout,))
            p[f"{name}_bn_var"] = 0.5 + jax.random.uniform(next(keys), (cout,))
    return p


def prepare_params(params, eps=1e-5):
    """One-time parameter layout: fold BN scale, build per-parity matmul weights (bf16)."""
    prep = {}
    wl = params["linear_w"].T.astype(jnp.float32)               # [115, 768]
    wl = jnp.pad(wl, ((0, 128 - wl.shape[0]), (0, 0)))
    prep["lin_w"] = wl.astype(jnp.bfloat16)
    prep["lin_b"] = params["linear_b"].astype(jnp.float32).reshape(1, -1)
    for name, _, _, _, _ in _GEN_CFG:
        w = params[f"{name}_w"].astype(jnp.float32)
        scale = None
        if f"{name}_bn_gamma" in params:
            g = params[f"{name}_bn_gamma"]
            b = params[f"{name}_bn_beta"]
            m = params[f"{name}_bn_mean"]
            v = params[f"{name}_bn_var"]
            scale = g * lax.rsqrt(v + eps)
            prep[f"{name}_bias"] = (b - m * scale).astype(jnp.float32)
        bms = prepare_conv_weights(w, scale)
        prep[f"{name}_B0"] = bms[0]
        prep[f"{name}_B1"] = bms[1]
    return prep


def generator_forward(prep, z, c):
    bsz = z.shape[0]
    zc = jnp.concatenate([z, c], axis=1)                        # [B, 115]
    zc = jnp.pad(zc, ((0, 0), (0, prep["lin_w"].shape[0] - zc.shape[1])))
    h = linear_pallas(zc.astype(jnp.bfloat16), prep["lin_w"], prep["lin_b"])
    x = h.astype(jnp.bfloat16).reshape(bsz, 1, 1, 1, -1)        # channels-last, 1x1x1
    for name, _, cout, k, act in _GEN_CFG:
        x = conv_transpose3d_prepared(
            x, {0: prep[f"{name}_B0"], 1: prep[f"{name}_B1"]},
            k=k, cout=cout, bias=prep.get(f"{name}_bias"), act=act)
    return jnp.transpose(x, (0, 4, 1, 2, 3)).astype(jnp.float32)    # NCDHW


# ----------------------------------------------------------------------------
# Numerical self-check of the polyphase conv-transpose against an XLA reference.
# ----------------------------------------------------------------------------
def _ref_conv_transpose3d(x_ncdhw, w, stride=2):
    k = w.shape[2]
    wf = jnp.transpose(jnp.flip(w, axis=(2, 3, 4)), (1, 0, 2, 3, 4))
    return lax.conv_general_dilated(
        x_ncdhw, wf, window_strides=(1, 1, 1),
        padding=[(k - 1, k - 1)] * 3, lhs_dilation=(stride,) * 3,
        dimension_numbers=("NCDHW", "OIDHW", "NCDHW"),
        precision=lax.Precision.HIGHEST)


def _self_check(key):
    for (s, cin, cout, k) in [(3, 16, 8, 5), (2, 16, 4, 8)]:
        key, k1, k2 = jax.random.split(key, 3)
        x = jax.random.normal(k1, (1, cin, s, s, s), jnp.float32)
        w = 0.1 * jax.random.normal(k2, (cin, cout, k, k, k), jnp.float32)
        bms = prepare_conv_weights(w, None)
        mine = conv_transpose3d_prepared(
            jnp.transpose(x, (0, 2, 3, 4, 1)), bms, k=k, cout=cout, bias=None, act=None)
        mine = jnp.transpose(mine, (0, 4, 1, 2, 3))
        ref = _ref_conv_transpose3d(x, w)
        err = jnp.max(jnp.abs(mine - ref)) / (jnp.max(jnp.abs(ref)) + 1e-6)
        assert float(err) < 3e-2, f"conv_transpose3d mismatch (k={k}): rel err {float(err)}"


if __name__ == "__main__":
    key = jax.random.PRNGKey(0)
    pkey, zkey, tkey = jax.random.split(key, 3)

    _self_check(tkey)                               # validates polyphase indexing numerically

    params = init_params(pkey)
    prep = jax.jit(prepare_params)(params)          # one-time weight layout / BN fold
    jax.block_until_ready(prep)

    # Module inputs: z in R^{B x 100}, class conditioning c in R^{B x 15}.  Batch = 1 keeps
    # the architecture-pinned 1 -> 5 -> 13 -> 29 -> 61 -> 128 volume pipeline small.
    z = jax.random.normal(zkey, (1, 100), jnp.float32)
    c = jax.nn.one_hot(jnp.array([7]), 15, dtype=jnp.float32)

    fwd = jax.jit(generator_forward)
    out = fwd(prep, z, c)
    jax.block_until_ready(out)

    assert out.shape == (1, 3, 128, 128, 128), out.shape
    assert bool(jnp.all(jnp.isfinite(out)))
    print("KERNEL_OK")
</pallas_src>

<mosaic_0001>
module attributes {stable_mosaic.version = 11 : i64} {
  func.func @_conv_mm_kernel(%arg0: i32, %arg1: i32, %arg2: memref<9x10x16xbf16, #tpu.memory_space<vmem>>, %arg3: memref<48x200xbf16, #tpu.memory_space<vmem>>, %arg4: memref<72x200xbf16, #tpu.memory_space<vmem>>) attributes {dimension_semantics = [#tpu.dimension_semantics<parallel>, #tpu.dimension_semantics<parallel>], iteration_bounds = array<i64: 1, 1>, scalar_prefetch = 0 : i64, scratch_operands = 0 : i64, tpu.core_type = #tpu.core_type<tc>, window_params = [{transform_indices = @transform_0, window_bounds = array<i64: 9, 10, 16>}, {transform_indices = @transform_1, window_bounds = array<i64: 48, 200>}, {transform_indices = @transform_2, window_bounds = array<i64: 72, 200>}]} {
    %c0 = arith.constant 0 : index
    %c2 = arith.constant 2 : index
    %c0_0 = arith.constant 0 : index
    %0 = vector.load %arg2[%c0, %c2, %c0_0] : memref<9x10x16xbf16, #tpu.memory_space<vmem>>, vector<9x8x16xbf16>
    %1 = vector.shape_cast %0 : vector<9x8x16xbf16> to vector<72x16xbf16>
    %c0_1 = arith.constant 0 : index
    %c0_2 = arith.constant 0 : index
    %2 = vector.load %arg3[%c0_1, %c0_2] : memref<48x200xbf16, #tpu.memory_space<vmem>>, vector<16x200xbf16>
    %cst = arith.constant dense<0.000000e+00> : vector<72x200xf32>
    %3 = tpu.matmul %1, %2, %cst {dimension_numbers = #tpu.dot_dimension_numbers<[1], [0], [0], [1], [0, 0, 1, 1], [], []>} : vector<72x16xbf16>, vector<16x200xbf16>, vector<72x200xf32> -> vector<72x200xf32>
    %c0_3 = arith.constant 0 : index
    %c1 = arith.constant 1 : index
    %c0_4 = arith.constant 0 : index
    %4 = vector.load %arg2[%c0_3, %c1, %c0_4] : memref<9x10x16xbf16, #tpu.memory_space<vmem>>, vector<9x8x16xbf16>
    %5 = vector.shape_cast %4 : vector<9x8x16xbf16> to vector<72x16xbf16>
    %c16 = arith.constant 16 : index
    %c0_5 = arith.constant 0 : index
    %6 = vector.load %arg3[%c16, %c0_5] : memref<48x200xbf16, #tpu.memory_space<vmem>>, vector<16x200xbf16>
    %cst_6 = arith.constant dense<0.000000e+00> : vector<72x200xf32>
    %7 = tpu.matmul %5, %6, %cst_6 {dimension_numbers = #tpu.dot_dimension_numbers<[1], [0], [0], [1], [0, 0, 1, 1], [], []>} : vector<72x16xbf16>, vector<16x200xbf16>, vector<72x200xf32> -> vector<72x200xf32>
    %8 = arith.addf %3, %7 : vector<72x200xf32>
    %c0_7 = arith.constant 0 : index
    %c0_8 = arith.constant 0 : index
    %c0_9 = arith.constant 0 : index
    %9 = vector.load %arg2[%c0_7, %c0_8, %c0_9] : memref<9x10x16xbf16, #tpu.memory_space<vmem>>, vector<9x8x16xbf16>
    %10 = vector.shape_cast %9 : vector<9x8x16xbf16> to vector<72x16xbf16>
    %c32 = arith.constant 32 : index
    %c0_10 = arith.constant 0 : index
    %11 = vector.load %arg3[%c32, %c0_10] : memref<48x200xbf16, #tpu.memory_space<vmem>>, vector<16x200xbf16>
    %cst_11 = arith.constant dense<0.000000e+00> : vector<72x200xf32>
    %12 = tpu.matmul %10, %11, %cst_11 {dimension_numbers = #tpu.dot_dimension_numbers<[1], [0], [0], [1], [0, 0, 1, 1], [], []>} : vector<72x16xbf16>, vector<16x200xbf16>, vector<72x200xf32> -> vector<72x200xf32>
    %13 = arith.addf %8, %12 : vector<72x200xf32>
    %14 = arith.truncf %13 : vector<72x200xf32> to vector<72x200xbf16>
    %c0_12 = arith.constant 0 : index
    %c0_13 = arith.constant 0 : index
    %15 = vector.load %arg4[%c0_12, %c0_13] : memref<72x200xbf16, #tpu.memory_space<vmem>>, vector<72x200xbf16>
    tpu.vector_store %arg4[%c0_12, %c0_13], %14 {strides = array<i32>} : memref<72x200xbf16, #tpu.memory_space<vmem>>, vector<72x200xbf16>,
    return
  }
  func.func @transform_0(%arg0: i32, %arg1: i32) -> (i32, i32, i32) {
    %c0_i32 = arith.constant 0 : i32
    %c0_i32_0 = arith.constant 0 : i32
    %c0_i32_1 = arith.constant 0 : i32
    return %arg1, %c0_i32, %c0_i32_0 : i32, i32, i32
  }
  func.func @transform_1(%arg0: i32, %arg1: i32) -> (i32, i32) {
    %c0_i32 = arith.constant 0 : i32
    %c0_i32_0 = arith.constant 0 : i32
    return %c0_i32, %arg0 : i32, i32
  }
  func.func @transform_2(%arg0: i32, %arg1: i32) -> (i32, i32) {
    %c0_i32 = arith.constant 0 : i32
    return %arg1, %arg0 : i32, i32
  }
}

</mosaic_0001>

<bundles_post_ra>
// kernel: tpu_custom_call.1
= control target key start
LH: loop header
LB: loop body
LE: loop exit
PB: predicated region body
PF: predicated region fallthrough
CT: control target
= control target key end

     0   :  { %7 = vsyncpa [#allocation3], 0  ;;  %s1115_s0 = inlined_call_operand.hbm [shape: bf16[9,10,16], index: 0, kind: input, shape index: {}]   ;;  %s1116_s1 = inlined_call_operand.hbm [shape: bf16[48,200], index: 1, kind: input, shape index: {}]   ;;  %s1117_s2 = inlined_call_operand.hbm [shape: bf16[72,200], index: 2, kind: output, shape index: {}]  }
   0x1   :  { %8 = vsyncpa [#allocation6], 0 }
   0x2   :  { %9 = vsyncpa [#allocation4], 0  ;;  %s940_s9 = smov [#allocation2]   ;;  %s868_s13 = scalar_lea.hbm %s1115_s0, 1152 }
   0x3   :  { %s15_s10 = sshll.u32 %s940_s9, 4  ;;  %p869_p0 = scmp.ne.s32.totalorder %s1115_s0, %s868_s13  ;;  %s16_s10 = int_to_ptr.vmem [resolvable:$true] %s15_s10 }
   0x4   :  { %p872_p1 = scmp.lt.u32.totalorder %s868_s13, %s1115_s0 }
   0x6   :  { %p874_p2 = pnand %p872_p1, %p869_p0 }
   0x8   :  { %877 = shalt.err (!%p874_p2)
}
   0x9   :  { %s878_s18 = scalar_lea.vmem %s16_s10, 1152  ;;  %p883_p4 = scmp.lt.s32.totalorder %s16_s10, %s16_s10 }
   0xa   :  { %p879_p3 = scmp.ne.s32.totalorder %s16_s10, %s878_s18  ;;  %p884_p5 = scmp.lt.s32.totalorder %s878_s18, %s878_s18 }
   0xc   :  { %p885_p6 = por %p884_p5, %p883_p4 }
   0xe   :  { %p886_p7 = pnand %p885_p6, %p879_p3 }
  0x10   :  { %889 = shalt.err (!%p886_p7)
}
  0x11   :  { %s941_s19 = smov 64   ;;  %s942_s20 = smov 4  }
  0x12   :  { %21 = dma.hbm_to_vmem [thread:$0]  %s1115_s0, 1152, %s16_s10, [#allocation3], %s941_s19, %s941_s19, %s942_s20  }
  0x13   :  { %s943_s23 = smov [#allocation5]   ;;  %s890_s27 = scalar_lea.hbm %s1116_s1, 768 }
  0x14   :  { %s27_s24 = sshll.u32 %s943_s23, 4  ;;  %p891_p8 = scmp.ne.s32.totalorder %s1116_s1, %s890_s27  ;;  %s28_s24 = int_to_ptr.vmem [resolvable:$true] %s27_s24 }
  0x15   :  { %p894_p9 = scmp.lt.u32.totalorder %s890_s27, %s1116_s1 }
  0x17   :  { %p896_p10 = pnand %p894_p9, %p891_p8 }
  0x19   :  { %899 = shalt.err (!%p896_p10)
}
  0x1a   :  { %s900_s4 = scalar_lea.vmem %s28_s24, 768  ;;  %p905_p12 = scmp.lt.s32.totalorder %s28_s24, %s28_s24 }
  0x1b   :  { %p901_p11 = scmp.ne.s32.totalorder %s28_s24, %s900_s4  ;;  %p906_p13 = scmp.lt.s32.totalorder %s900_s4, %s900_s4 }
  0x1d   :  { %p907_p0 = por %p906_p13, %p905_p12 }
  0x1f   :  { %p908_p1 = pnand %p907_p0, %p901_p11 }
  0x21   :  { %911 = shalt.err (!%p908_p1)
}
  0x22   :  { %s944_s0 = smov 128   ;;  %s945_s5 = smov 8  }
  0x23   :  { %33 = dma.hbm_to_vmem [thread:$0]  %s1116_s1, 768, %s28_s24, [#allocation6], %s944_s0, %s944_s0, %s945_s5  }
  0x24   :  { %934 = dma.done.wait [#allocation3], 1152  }
  0x25   :  { %935 = vsyncadd [#allocation3], 4294966144 }
  0x26   :  { %936 = dma.done.wait [#allocation6], 768  }
  0x27   :  { %937 = vsyncadd [#allocation6], 4294966528  ;;  %v946_v0 = vmov 0   ;;  %vm77_vm0 = vcmask 1042432   ;;  %vm78_vm1 = vcmask 1046532   ;;  %vm282_vm3 = vcmask 130048  }
  0x28   :  { %450 = vmatprep.mubr.bf16.mxu0 %v946_v0  ;;  %330 = vmatprep.mubr.bf16.mxu1 %v946_v0  ;;  %vm992_vm2 = vmor %vm77_vm0, %vm78_vm1  ;;  %v854_v2 = vld [vmem:[#allocation5 + $0x4] ss:$8 sps:$4 sm:$0xff]   ;;  %vm127_vm4 = vsmask.f32 3328  ;;  %v996_v3 = vld [vmem:[#allocation5] ss:$8 sps:$4 sm:$0xff]  }
  0x29   :  { %v41_v4 = vld [vmem:[#allocation2] sm:$0xe]  ;;  %v42_v5 = vld [vmem:[#allocation2 + $0x4] sm:$0x1]  ;;  %418 = vmatprep.subr.bf16.mxu0 %v854_v2  ;;  %v43_v6 = vld [vmem:[#allocation2 + $0x8] sm:$0xe] }
  0x2a   :  { %v44_v7 = vld [vmem:[#allocation2 + $0xc] sm:$0x1]  ;;  %v743_v8 = vrot.slane %v41_v4, 9  ;;  %v82_v9 = vrot.slane %v42_v5, 5  ;;  %419 = vmatpush1.bf16.msra.mxu0 %v996_v3  ;;  %v744_v10 = vrot.slane %v43_v6, 9  ;;  %v140_v15 = vshll.u32 %v42_v5, 16 }
  0x2b   :  { %v86_v11 = vrot.slane %v44_v7, 5  ;;  %v857_v12 = vld [vmem:[#allocation5 + $0x20] ss:$8 sps:$4 sm:$0xff]   ;;  %v859_v14 = vld [vmem:[#allocation5 + $0x24] ss:$8 sps:$4 sm:$0xff]   ;;  %v154_v16 = vshll.u32 %v44_v7, 16 }
  0x2c   :  { %v83_v13 = vsel %vm992_vm2, %v743_v8, %v82_v9  ;;  %v860_v18 = vld [vmem:[#allocation5 + $0x14] ss:$8 sps:$4 sm:$0xff]   ;;  %v862_v19 = vld [vmem:[#allocation5 + $0x10] ss:$8 sps:$4 sm:$0xff]   ;;  %558 = vmatprep.subr.bf16.mxu0 %v859_v14  ;;  %v119_v22 = vld [vmem:[#allocation2 + $0x8] sm:$0xf] }
  0x2d   :  { %v87_v17 = vsel %vm992_vm2, %v744_v10, %v86_v11  ;;  %v118_v20 = vld [vmem:[#allocation2] sm:$0xf]  ;;  %vm128_vm5 = vsmask.f32 7440  ;;  %298 = vmatprep.subr.bf16.mxu1 %v860_v18  ;;  %v142_v25 = vrot.slane %v140_v15, 5  ;;  %v145_v26 = vshrl.u32 %v119_v22, 16 }
  0x2e   :  { %v764_v21 = vcombine.low %v83_v13, %v87_v17  ;;  %v131_v23 = vshrl.u32 %v118_v20, 16  ;;  %v134_v24 = vshll.u32 %v118_v20, 16  ;;  %v148_v27 = vshll.u32 %v119_v22, 16  ;;  %v45_v29 = vld [vmem:[#allocation2 + $0x10] sm:$0xe]  ;;  %299 = vmatpush1.bf16.msra.mxu1 %v862_v19  ;;  %vm1007_vm6 = vmor %vm127_vm4, %vm128_vm5  ;;  %s947_s1 = smov [#allocation7]  }
  0x2f   :  { %v156_v28 = vrot.slane %v154_v16, 5  ;;  %v46_v32 = vld [vmem:[#allocation2 + $0x14] sm:$0x1]  ;;  %v47_v33 = vld [vmem:[#allocation2 + $0x18] sm:$0xe]  ;;  %v147_v34 = vrot.slane %v145_v26, 4  ;;  %806 = vmatprep.subr.bf16.mxu1 %v854_v2 }
  0x30   :  { %771 = vmatmul.mubr.msk.bf16.vlgmr.msra.gmra.mrb[0].mxu0 %vm282_vm3, %v764_v21  ;;  %v133_v30 = vrot.slane %v131_v23, 4  ;;  %v136_v31 = vrot.slane %v134_v24, 5  ;;  %v150_v35 = vrot.slane %v148_v27, 5  ;;  %v48_v36 = vld [vmem:[#allocation2 + $0x1c] sm:$0x1]  ;;  %v745_v37 = vrot.slane %v45_v29, 9 }
  0x31   :  { %559 = vmatpush1.bf16.msra.mxu0 %v857_v12  ;;  %460 = vmatprep.mubr.bf16.mxu0 %v946_v0  ;;  %v90_v38 = vrot.slane %v46_v32, 5  ;;  %v746_v40 = vrot.slane %v47_v33, 9  ;;  %v94_v41 = vrot.slane %v48_v36, 5  ;;  %v120_v42 = vld [vmem:[#allocation2 + $0x10] sm:$0xf]  ;;  %v168_v53 = vshll.u32 %v46_v32, 16 }
  0x32   :  { %v137_v39 = vor.u32 %v136_v31, %v133_v30  ;;  %v121_v43 = vld [vmem:[#allocation2 + $0x18] sm:$0xf]  ;;  %v151_v45 = vor.u32 %v150_v35, %v147_v34  ;;  %v159_v47 = vshrl.u32 %v120_v42, 16  ;;  %v162_v48 = vshll.u32 %v120_v42, 16  ;;  %v49_v49 = vld [vmem:[#allocation2 + $0x20] sm:$0xe] }
  0x33   :  { %v91_v46 = vsel %vm992_vm2, %v745_v37, %v90_v38  ;;  %v50_v50 = vld [vmem:[#allocation2 + $0x24] sm:$0x1]  ;;  %v95_v52 = vsel %vm992_vm2, %v746_v40, %v94_v41  ;;  %v173_v54 = vshrl.u32 %v121_v43, 16  ;;  %v51_v55 = vld [vmem:[#allocation2 + $0x28] sm:$0xe]  ;;  %v170_v62 = vrot.slane %v168_v53, 5 }
  0x34   :  { %v138_v51 = vrot.slane %v137_v39, 4  ;;  %v152_v56 = vrot.slane %v151_v45, 4  ;;  %v765_v57 = vcombine.low %v91_v46, %v95_v52  ;;  %v161_v58 = vrot.slane %v159_v47, 4  ;;  %v52_v60 = vld [vmem:[#allocation2 + $0x2c] sm:$0x1]  ;;  %s730_s8 = sshll.u32 %s947_s1, 4  ;;  %s731_s8 = int_to_ptr.vmem [resolvable:$true] %s730_s8 }
  0x35   :  { %v164_v59 = vrot.slane %v162_v48, 5  ;;  %v175_v63 = vrot.slane %v173_v54, 4  ;;  %v176_v2 = vshll.u32 %v121_v43, 16  ;;  %v122_v4 = vld [vmem:[#allocation2 + $0x20] sm:$0xf]  ;;  %v182_v7 = vshll.u32 %v48_v36, 16  ;;  %p917_p3 = scmp.lt.s32.totalorder %s731_s8, %s731_s8 }
  0x36   :  { %v143_v61 = vsel %vm1007_vm6, %v138_v51, %v142_v25  ;;  %v157_v5 = vsel %vm1007_vm6, %v152_v56, %v156_v28  ;;  %v747_v8 = vrot.slane %v49_v49, 9  ;;  %v123_v9 = vld [vmem:[#allocation2 + $0x28] sm:$0xf]  ;;  %v98_v12 = vrot.slane %v50_v50, 5  ;;  %v124_v25 = vld [vmem:[#allocation2 + $0x30] sm:$0xf] }
  0x37   :  { %v165_v6 = vor.u32 %v164_v59, %v161_v58  ;;  %v752_v10 = vcombine.low %v143_v61, %v157_v5  ;;  %v178_v11 = vrot.slane %v176_v2, 5  ;;  %v748_v13 = vrot.slane %v51_v55, 9  ;;  %v125_v30 = vld [vmem:[#allocation2 + $0x38] sm:$0xf]  ;;  %v1032_v36 = vld [vmem:[#allocation2 + $0x34] sm:$0x1] }
  0x38   :  { %772 = vmatmul.mubr.msk.bf16.gmra.mrb[4].mxu0 %vm282_vm3, %v765_v57  ;;  %v184_v15 = vrot.slane %v182_v7, 5  ;;  %v102_v16 = vrot.slane %v52_v60, 5  ;;  %v187_v17 = vshrl.u32 %v122_v4, 16  ;;  %v99_v19 = vsel %vm992_vm2, %v747_v8, %v98_v12  ;;  %v1034_v40 = vld [vmem:[#allocation2 + $0x3c] sm:$0x1]  ;;  %s912_s9 = scalar_lea.vmem %s731_s8, 1152 }
  0x39   :  { %v166_v14 = vrot.slane %v165_v6, 4  ;;  %470 = vmatprep.mubr.bf16.mxu0 %v946_v0  ;;  %759 = vmatmul.mubr.msk.bf16.vlgmr.msra.gmra.mrb[0].mxu1 %vm282_vm3, %v752_v10  ;;  %v179_v18 = vor.u32 %v178_v11, %v175_v63  ;;  %v190_v20 = vshll.u32 %v122_v4, 16  ;;  %v196_v21 = vshll.u32 %v50_v50, 16  ;;  %v126_v42 = vld [vmem:[#allocation2 + $0x40] sm:$0xf]  ;;  %p913_p2 = scmp.ne.s32.totalorder %s731_s8, %s912_s9  ;;  %p918_p4 = scmp.lt.s32.totalorder %s912_s9, %s912_s9 }
  0x3a   :  { %807 = vmatpush1.bf16.msra.mxu1 %v996_v3  ;;  %340 = vmatprep.mubr.bf16.mxu1 %v946_v0  ;;  %v103_v22 = vsel %vm992_vm2, %v748_v13, %v102_v16  ;;  %v189_v23 = vrot.slane %v187_v17, 4  ;;  %v201_v24 = vshrl.u32 %v123_v9, 16  ;;  %v204_v32 = vshll.u32 %v123_v9, 16  ;;  %v863_v59 = vld [vmem:[#allocation2] ss:$8 sps:$4 sm:$0xff]  }
  0x3b   :  { %v171_v26 = vsel %vm1007_vm6, %v166_v14, %v170_v62  ;;  %v180_v27 = vrot.slane %v179_v18, 4  ;;  %v766_v28 = vcombine.low %v99_v19, %v103_v22  ;;  %v192_v29 = vrot.slane %v190_v20, 5  ;;  %v58_v9 = vld [vmem:[#allocation2 + $0x44] sm:$0x1]  ;;  %v864_v14 = vld [vmem:[#allocation2 + $0x10] ss:$8 sps:$4 sm:$0xff]   ;;  %p919_p5 = por %p918_p4, %p917_p3 }
  0x3c   :  { %v203_v31 = vrot.slane %v201_v24, 4  ;;  %v210_v33 = vshll.u32 %v52_v60, 16  ;;  %v198_v35 = vrot.slane %v196_v21, 5  ;;  %v215_v37 = vshrl.u32 %v124_v25, 16  ;;  %v865_v19 = vld [vmem:[#allocation2 + $0x20] ss:$8 sps:$4 sm:$0xff]  }
  0x3d   :  { %v185_v3 = vsel %vm1007_vm6, %v180_v27, %v184_v15  ;;  %v193_v34 = vor.u32 %v192_v29, %v189_v23  ;;  %v206_v39 = vrot.slane %v204_v32, 5  ;;  %v218_v41 = vshll.u32 %v124_v25, 16  ;;  %v53_v20 = vld [vmem:[#allocation2 + $0x30] sm:$0xe]  ;;  %v55_v21 = vld [vmem:[#allocation2 + $0x38] sm:$0xe]  ;;  %p920_p6 = pnand %p919_p5, %p913_p2 }
  0x3e   :  { %v753_v38 = vcombine.low %v171_v26, %v185_v3  ;;  %v217_v45 = vrot.slane %v215_v37, 4  ;;  %v229_v46 = vshrl.u32 %v125_v30, 16  ;;  %v212_v48 = vrot.slane %v210_v33, 5  ;;  %v57_v29 = vld [vmem:[#allocation2 + $0x40] sm:$0xe] }
  0x3f   :  { %v194_v43 = vrot.slane %v193_v34, 4  ;;  %v207_v47 = vor.u32 %v206_v39, %v203_v31  ;;  %v220_v49 = vrot.slane %v218_v41, 5  ;;  %v232_v50 = vshll.u32 %v125_v30, 16  ;;  %v867_v3 = vld [vmem:[#allocation2 + $0x40] ss:$0 sps:$4 sm:$0xff]  }
  0x40   :  { %773 = vmatmul.mubr.msk.bf16.gmra.mrb[8].mxu0 %vm282_vm3, %v766_v28  ;;  %v224_v52 = vshll.u32 %v1032_v36, 16  ;;  %v231_v53 = vrot.slane %v229_v46, 4  ;;  %v238_v54 = vshll.u32 %v1034_v40, 16  ;;  %v243_v58 = vshrl.u32 %v126_v42, 16  ;;  %v866_v28 = vld [vmem:[#allocation2 + $0x30] ss:$8 sps:$4 sm:$0xff]  }
  0x41   :  { %590 = vmatprep.mubr.bf16.mxu0 %v946_v0  ;;  %760 = vmatmul.mubr.msk.bf16.gmra.mrb[4].mxu1 %vm282_vm3, %v753_v38  ;;  %v199_v51 = vsel %vm1007_vm6, %v194_v43, %v198_v35  ;;  %v208_v55 = vrot.slane %v207_v47, 4  ;;  %v221_v56 = vor.u32 %v220_v49, %v217_v45  ;;  %v234_v57 = vrot.slane %v232_v50, 5 }
  0x42   :  { %350 = vmatprep.mubr.bf16.mxu1 %v946_v0  ;;  %v246_v60 = vshll.u32 %v126_v42, 16  ;;  %v226_v2 = vrot.slane %v224_v52, 5  ;;  %v240_v4 = vrot.slane %v238_v54, 5  ;;  %v245_v7 = vrot.slane %v243_v58, 4 }
  0x43   :  { %v213_v61 = vsel %vm1007_vm6, %v208_v55, %v212_v48  ;;  %v235_v62 = vor.u32 %v234_v57, %v231_v53  ;;  %v222_v5 = vrot.slane %v221_v56, 4  ;;  %v252_v13 = vshll.u32 %v58_v9, 16 }
  0x44   :  { %v754_v63 = vcombine.low %v199_v51, %v213_v61  ;;  %v248_v8 = vrot.slane %v246_v60, 5  ;;  %v106_v23 = vrot.slane %v1032_v36, 5  ;;  %v110_v24 = vrot.slane %v1034_v40, 5 }
  0x45   :  { %v236_v6 = vrot.slane %v235_v62, 4  ;;  %v227_v10 = vsel %vm1007_vm6, %v222_v5, %v226_v2  ;;  %v254_v17 = vrot.slane %v252_v13, 5  ;;  %v749_v25 = vrot.slane %v53_v20, 9 }
  0x46   :  { %v249_v12 = vor.u32 %v248_v8, %v245_v7  ;;  %v750_v26 = vrot.slane %v55_v21, 9  ;;  %v751_v31 = vrot.slane %v57_v29, 9  ;;  %v114_v32 = vrot.slane %v58_v9, 5 }
  0x47   :  { %v241_v11 = vsel %vm1007_vm6, %v236_v6, %v240_v4  ;;  %v107_v44 = vsel %vm992_vm2, %v749_v25, %v106_v23  ;;  %vm713_vm7 = vcmask 1043456   ;;  %vm714_vm8 = vcmask 588804  }
  0x48   :  { %783 = vmatmul.mubr.msk.bf16.vlgmr.msra.gmra.mrb[0].mxu0 %vm282_vm3, %v863_v59  ;;  %v755_v15 = vcombine.low %v227_v10, %v241_v11  ;;  %v250_v16 = vrot.slane %v249_v12, 4  ;;  %v111_v27 = vsel %vm992_vm2, %v750_v26, %v110_v24  ;;  %v115_v33 = vsel %vm992_vm2, %v751_v31, %v114_v32  ;;  %vm1078_vm9 = vmor %vm714_vm8, %vm713_vm7 }
  0x49   :  { %600 = vmatprep.mubr.bf16.mxu0 %v946_v0  ;;  %761 = vmatmul.mubr.msk.bf16.gmra.mrb[8].mxu1 %vm282_vm3, %v754_v63  ;;  %v767_v30 = vcombine.low %v107_v44, %v111_v27  ;;  %v768_v34 = vcombine.low %v115_v33, %v115_v33 }
  0x4a   :  { %360 = vmatprep.mubr.bf16.mxu1 %v946_v0  ;;  %v255_v18 = vsel %vm1007_vm6, %v250_v16, %v254_v17 }
  0x4b   :  { %v756_v22 = vcombine.low %v255_v18, %v255_v18 }
  0x50   :  { %784 = vmatmul.mubr.msk.bf16.gmra.mrb[4].mxu0 %vm282_vm3, %v864_v14 }
  0x51   :  { %610 = vmatprep.mubr.bf16.mxu0 %v946_v0  ;;  %762 = vmatmul.mubr.msk.bf16.gmra.mrb[12].mxu1 %vm282_vm3, %v755_v15 }
  0x52   :  { %370 = vmatprep.mubr.bf16.mxu1 %v946_v0 }
  0x58   :  { %785 = vmatmul.mubr.msk.bf16.gmra.mrb[8].mxu0 %vm282_vm3, %v865_v19 }
  0x59   :  { %620 = vmatprep.mubr.bf16.mxu0 %v946_v0  ;;  %763 = vmatmul.mubr.msk.bf16.gmra.mrb[16].mxu1 %vm282_vm3, %v756_v22 }
  0x5a   :  { %480 = vmatprep.mubr.bf16.mxu1 %v946_v0 }
  0x60   :  { %786 = vmatmul.mubr.msk.bf16.gmra.mrb[12].mxu0 %vm282_vm3, %v866_v28 }
  0x61   :  { %630 = vmatprep.mubr.bf16.mxu0 %v946_v0  ;;  %774 = vmatmul.mubr.msk.bf16.vlgmr.msra.gmra.mrb[12].mxu1 %vm282_vm3, %v767_v30 }
  0x62   :  { %490 = vmatprep.mubr.bf16.mxu1 %v946_v0 }
  0x68   :  { %787 = vmatmul.mubr.msk.bf16.gmra.mrb[16].mxu0 %vm282_vm3, %v867_v3 }
  0x69   :  { %775 = vmatmul.mubr.msk.bf16.gmra.mrb[16].mxu1 %vm282_vm3, %v768_v34 }
 0x10c   :  { %v332_v35 = vpop.f32.mrb[0].mxu1 }
 0x10d   :  { %v334_v36 = vpop.f32.mrb[1].mxu1 }
 0x10e   :  { %v336_v37 = vpop.f32.mrb[2].mxu1 }
 0x10f   :  { %v338_v38 = vpop.f32.mrb[3].mxu1 }
 0x114   :  { %v342_v39 = vpop.f32.mrb[4].mxu1 }
 0x115   :  { %v344_v40 = vpop.f32.mrb[5].mxu1 }
 0x116   :  { %v346_v41 = vpop.f32.mrb[6].mxu1 }
 0x117   :  { %v348_v42 = vpop.f32.mrb[7].mxu1 }
 0x11b   :  { %v592_v43 = vpop.f32.mrb[0].mxu0 }
 0x11c   :  { %v808_v0 = vadd.f32 %v592_v43, %v332_v35  ;;  %v594_v1 = vpop.f32.mrb[1].mxu0  ;;  %v352_v45 = vpop.f32.mrb[8].mxu1 }
 0x11d   :  { %v809_v46 = vadd.f32 %v594_v1, %v334_v36  ;;  %v596_v47 = vpop.f32.mrb[2].mxu0  ;;  %v354_v48 = vpop.f32.mrb[9].mxu1 }
 0x11e   :  { %v810_v50 = vadd.f32 %v596_v47, %v336_v37  ;;  %v598_v51 = vpop.f32.mrb[3].mxu0  ;;  %v356_v52 = vpop.f32.mrb[10].mxu1 }
 0x11f   :  { %v797_v53 = vpack.c.bf16 %v809_v46, %v808_v0  ;;  %v811_v54 = vadd.f32 %v598_v51, %v338_v38  ;;  %v358_v55 = vpop.f32.mrb[11].mxu1 }
 0x121   :  { %716 = vst.msk [vmem:[#allocation7] sm:$0xff] %vm1078_vm9, %v797_v53  ;;  %v798_v56 = vpack.c.bf16 %v811_v54, %v810_v50 }
 0x123   :  { %717 = vst.msk [vmem:[#allocation7 + $0x8] sm:$0xff] %vm1078_vm9, %v798_v56  ;;  %v602_v57 = vpop.f32.mrb[4].mxu0 }
 0x124   :  { %v812_v58 = vadd.f32 %v602_v57, %v342_v39  ;;  %v604_v59 = vpop.f32.mrb[5].mxu0 }
 0x125   :  { %v813_v60 = vadd.f32 %v604_v59, %v344_v40  ;;  %v606_v61 = vpop.f32.mrb[6].mxu0 }
 0x126   :  { %v814_v62 = vadd.f32 %v606_v61, %v346_v41  ;;  %v608_v63 = vpop.f32.mrb[7].mxu0 }
 0x127   :  { %v799_v2 = vpack.c.bf16 %v813_v60, %v812_v58  ;;  %v815_v4 = vadd.f32 %v608_v63, %v348_v42 }
 0x129   :  { %718 = vst.msk [vmem:[#allocation7 + $0x10] sm:$0xff] %vm1078_vm9, %v799_v2  ;;  %v800_v5 = vpack.c.bf16 %v815_v4, %v814_v62 }
 0x12b   :  { %719 = vst.msk [vmem:[#allocation7 + $0x18] sm:$0xff] %vm1078_vm9, %v800_v5  ;;  %v612_v6 = vpop.f32.mrb[8].mxu0 }
 0x12c   :  { %v816_v7 = vadd.f32 %v612_v6, %v352_v45  ;;  %v614_v8 = vpop.f32.mrb[9].mxu0 }
 0x12d   :  { %v817_v9 = vadd.f32 %v614_v8, %v354_v48  ;;  %v616_v10 = vpop.f32.mrb[10].mxu0 }
 0x12e   :  { %v818_v11 = vadd.f32 %v616_v10, %v356_v52  ;;  %v618_v12 = vpop.f32.mrb[11].mxu0 }
 0x12f   :  { %v801_v13 = vpack.c.bf16 %v817_v9, %v816_v7  ;;  %v819_v14 = vadd.f32 %v618_v12, %v358_v55 }
 0x131   :  { %720 = vst.msk [vmem:[#allocation7 + $0x20] sm:$0xff] %vm1078_vm9, %v801_v13  ;;  %v802_v15 = vpack.c.bf16 %v819_v14, %v818_v11 }
 0x133   :  { %721 = vst.msk [vmem:[#allocation7 + $0x28] sm:$0xff] %vm1078_vm9, %v802_v15  ;;  %v622_v16 = vpop.f32.mrb[12].mxu0 }
 0x134   :  { %v624_v17 = vpop.f32.mrb[13].mxu0  ;;  %v482_v18 = vpop.f32.mrb[12].mxu1 }
 0x135   :  { %v626_v19 = vpop.f32.mrb[14].mxu0  ;;  %v484_v20 = vpop.f32.mrb[13].mxu1  ;;  %v820_v21 = vadd.f32 %v622_v16, %v482_v18 }
 0x136   :  { %v628_v22 = vpop.f32.mrb[15].mxu0  ;;  %v486_v23 = vpop.f32.mrb[14].mxu1  ;;  %v821_v24 = vadd.f32 %v624_v17, %v484_v20 }
 0x137   :  { %v488_v25 = vpop.f32.mrb[15].mxu1  ;;  %v822_v26 = vadd.f32 %v626_v19, %v486_v23 }
 0x138   :  { %v803_v44 = vpack.c.bf16 %v821_v24, %v820_v21  ;;  %v823_v27 = vadd.f32 %v628_v22, %v488_v25 }
 0x13a   :  { %722 = vst.msk [vmem:[#allocation7 + $0x30] sm:$0xff] %vm1078_vm9, %v803_v44  ;;  %v804_v28 = vpack.c.bf16 %v823_v27, %v822_v26 }
 0x13b   :  { %v632_v29 = vpop.f32.mrb[16].mxu0 }
 0x13c   :  { %v634_v30 = vpop.f32.mrb[17].mxu0  ;;  %723 = vst.msk [vmem:[#allocation7 + $0x38] sm:$0xff] %vm1078_vm9, %v804_v28  ;;  %v492_v31 = vpop.f32.mrb[16].mxu1 }
 0x13d   :  { %v636_v32 = vpop.f32.mrb[18].mxu0  ;;  %v494_v33 = vpop.f32.mrb[17].mxu1  ;;  %v824_v3 = vadd.f32 %v632_v29, %v492_v31 }
 0x13e   :  { %v637_v34 = vpop.f32.mrb[19].mxu0  ;;  %v496_v35 = vpop.f32.mrb[18].mxu1  ;;  %v825_v36 = vadd.f32 %v634_v30, %v494_v33 }
 0x13f   :  { %v497_v37 = vpop.f32.mrb[19].mxu1 }
 0x140   :  { %v805_v38 = vpack.c.bf16 %v825_v36, %v824_v3 }
 0x142   :  { %724 = vst.msk [vmem:[#allocation7 + $0x40] sm:$0xff] %vm1078_vm9, %v805_v38 }
 0x143   :  { %923 = shalt.err (!%p920_p6)
}
 0x144   :  { %s924_s12 = scalar_lea.hbm %s1117_s2, 1152 }
 0x145   :  { %p925_p7 = scmp.ne.s32.totalorder %s1117_s2, %s924_s12  ;;  %p928_p8 = scmp.lt.u32.totalorder %s924_s12, %s1117_s2 }
 0x147   :  { %p930_p9 = pnand %p928_p8, %p925_p7 }
 0x149   :  { %933 = shalt.err (!%p930_p9)
}
 0x14a   :  { %736 = dma.vmem_to_hbm [thread:$0]  %s731_s8, 1152, %s1117_s2, [#allocation4], %s944_s0, %s944_s0, %s945_s5  }
 0x14b   :  { %938 = dma.done.wait [#allocation4], 1152  }
 0x14c   :  { %939 = vsyncadd [#allocation4], 4294966144 }
 0x14d   :  { %740 = vsyncpa [#allocation3], 1 }
 0x14e   :  { %741 = vsyncpa [#allocation6], 1 }
 0x14f   :  { %742 = vsyncpa [#allocation4], 1 }

</bundles_post_ra>
